<compile_context>
chip_gen: v7x
topology: tpu7x:2x2x1
jax: 0.10.0
libtpu: 0.0.40
codegen_flags: <defaults>
</compile_context>

<pallas_src>
import functools

import jax
import jax.numpy as jnp
from jax.experimental import pallas as pl
from jax.experimental.pallas import tpu as pltpu


def _round_up(x, m):
    return ((x + m - 1) // m) * m


def _pick_block(padded, unit, target):
    """Largest multiple of `unit` that divides `padded` and is <= max(target, unit)."""
    b = max(unit, (min(padded, target) // unit) * unit)
    while padded % b:
        b -= unit
    return b


def _dual_tensorcore_chip():
    """True iff the local TPU has two TensorCores per chip (v7x)."""
    try:
        kind = jax.devices()[0].device_kind.lower()
    except Exception:
        return False
    return "7" in kind


def _norm_ball_kernel(agents_ref, ego_ref, h_ref, *, r2):
    # agents_ref: (1, 2, A_blk, T_blk); ego_ref: (1, 2, 1, T_blk);
    # h_ref: (1, A_blk, T_blk).  The x/y split is a zero-cost static index; the
    # (1, T_blk) ego row sublane-broadcasts on the VPU.
    dx = agents_ref[0, 0] - ego_ref[0, 0]
    dy = agents_ref[0, 1] - ego_ref[0, 1]
    h_ref[0, :, :] = dx * dx + dy * dy - r2


def norm_ball_cbf_forward(states, safe_radius=1.0, *, force_tiled=False):
    """JAX/Pallas equivalent of NormBallCBF(safe_radius).forward(states).

    Args:
      states: [B, A+1, T, D_states]; channels 0/1 = x/y; agent index 0 = ego.
    Returns:
      h_vals: [B, A, T-1] float32.
    """
    states = jnp.asarray(states, jnp.float32)
    B, A1, T, _ = states.shape
    A, Tm1 = A1 - 1, T - 1
    assert A >= 1 and Tm1 >= 1
    # safe_radius is baked at trace time; pass via an SMEM scalar if it must
    # vary at runtime without recompiling.
    r2 = float(safe_radius) ** 2

    # Pack the two coordinate planes once (pure layout plumbing, 2 XLA ops).
    agents = jnp.transpose(states[:, 1:, 1:, 0:2], (0, 3, 1, 2))   # [B, 2, A, Tm1]
    ego = jnp.transpose(states[:, 0:1, 1:, 0:2], (0, 3, 1, 2))     # [B, 2, 1, Tm1]

    kernel = functools.partial(_norm_ball_kernel, r2=r2)
    flops = 6 * B * A * Tm1

    def _blk_bytes(a_blk, t_blk):
        # VMEM bytes of one block set, with Mosaic's (8, 128) physical padding.
        a8, t128 = _round_up(a_blk, 8), _round_up(t_blk, 128)
        agents_b = 2 * a8 * t128 * 4
        ego_b = 2 * 8 * t128 * 4
        out_b = a8 * t128 * 4
        return agents_b + ego_b + out_b

    # ------------- full-extent path: no padding, no post-slice --------------
    FULL_BUDGET = 8 << 20          # conservative double-buffered budget, all gens
    if not force_tiled and 2 * _blk_bytes(A, Tm1) <= FULL_BUDGET:
        vmem_limit = int(min(48 << 20,
                             max(16 << 20, 2 * _blk_bytes(A, Tm1) + (4 << 20))))
        cost = pl.CostEstimate(
            flops=flops, transcendentals=0,
            bytes_accessed=4 * (agents.size + ego.size + B * A * Tm1))
        return pl.pallas_call(
            kernel,
            out_shape=jax.ShapeDtypeStruct((B, A, Tm1), jnp.float32),
            grid=(B,),
            in_specs=[pl.BlockSpec((1, 2, A, Tm1), lambda b: (b, 0, 0, 0)),
                      pl.BlockSpec((1, 2, 1, Tm1), lambda b: (b, 0, 0, 0))],
            out_specs=pl.BlockSpec((1, A, Tm1), lambda b: (b, 0, 0)),
            compiler_params=pltpu.CompilerParams(
                dimension_semantics=("parallel",),
                vmem_limit_bytes=vmem_limit),
            cost_estimate=cost,
        )(agents, ego)

    # ------------- padded tiled path (large B*A*T) ---------------------------
    A_pad = _round_up(A, 8)        # sublane multiple
    T_pad = _round_up(Tm1, 128)    # lane multiple -> unmasked full-vreg stores
    agents = jnp.pad(agents, ((0, 0), (0, 0), (0, A_pad - A), (0, T_pad - Tm1)))
    ego = jnp.pad(ego, ((0, 0), (0, 0), (0, 0), (0, T_pad - Tm1)))
    # Padded agents / timesteps produce garbage h values; they are sliced off
    # below and nothing in the kernel reduces across them.

    a_blk = _pick_block(A_pad, 8, 512)
    t_blk = _pick_block(T_pad, 128, 1024)
    BUDGET = 12 << 20              # double-buffered total, fits v5e's 16 MiB default
    while 2 * _blk_bytes(a_blk, t_blk) > BUDGET:
        if t_blk >= 256:
            t_blk = _pick_block(T_pad, 128, t_blk - 128)
        elif a_blk >= 16:
            a_blk = _pick_block(A_pad, 8, a_blk - 8)
        else:
            break

    # Only v7x has a second TensorCore worth splitting an already-fitting tile.
    if _dual_tensorcore_chip() and B * (T_pad // t_blk) * (A_pad // a_blk) < 2:
        if T_pad // 128 >= 2:
            t_blk = _pick_block(T_pad, 128, T_pad // 2)
        elif A_pad // 8 >= 2:
            a_blk = _pick_block(A_pad, 8, A_pad // 2)

    # A innermost: ego block index (b, 0, 0, j) is constant across it, so the
    # ego tile is not re-DMA'd every A step.
    grid = (B, T_pad // t_blk, A_pad // a_blk)
    vmem_limit = int(min(48 << 20,
                         max(16 << 20, 2 * _blk_bytes(a_blk, t_blk) + (4 << 20))))
    cost = pl.CostEstimate(
        flops=flops, transcendentals=0,
        bytes_accessed=4 * (agents.size + ego.size + B * A_pad * T_pad))

    h = pl.pallas_call(
        kernel,
        out_shape=jax.ShapeDtypeStruct((B, A_pad, T_pad), jnp.float32),
        grid=grid,
        in_specs=[pl.BlockSpec((1, 2, a_blk, t_blk), lambda b, j, i: (b, 0, i, j)),
                  pl.BlockSpec((1, 2, 1, t_blk), lambda b, j, i: (b, 0, 0, j))],
        out_specs=pl.BlockSpec((1, a_blk, t_blk), lambda b, j, i: (b, i, j)),
        compiler_params=pltpu.CompilerParams(
            dimension_semantics=("parallel", "parallel", "parallel"),
            vmem_limit_bytes=vmem_limit),
        cost_estimate=cost,
    )(agents, ego)
    # Consumers that accept the padded (A_pad, T_pad) layout can take `h`
    # directly and skip this final unpad copy.
    return h[:, :A, :Tm1]


def _reference_forward(states, safe_radius=1.0):
    """Pure-JAX mirror of the torch NormBallCBF.forward."""
    states = jnp.asarray(states, jnp.float32)
    ego = states[:, 0, 1:, 0:2]            # [B, T-1, 2]
    agents = states[:, 1:, 1:, 0:2]        # [B, A, T-1, 2]
    d = agents - ego[:, None, :, :]
    return jnp.sum(d * d, axis=-1) - float(safe_radius) ** 2


if __name__ == "__main__":
    key = jax.random.PRNGKey(0)
    B, A, T, D = 2, 4, 8, 4                # states: [B, A+1, T, D_states]
    states = jax.random.normal(key, (B, A + 1, T, D), jnp.float32) \
        * jnp.array([10.0, 10.0, 5.0, 3.0], jnp.float32)

    h_ref = _reference_forward(states, safe_radius=1.0)

    # Fast path: full-extent blocks, no padding, no post-kernel slice.
    h = jax.block_until_ready(norm_ball_cbf_forward(states, safe_radius=1.0))
    assert h.shape == (B, A, T - 1), h.shape
    assert jnp.allclose(h, h_ref, atol=1e-4, rtol=1e-4), (h, h_ref)

    # Also exercise the padded tiled path (used automatically for large B*A*T).
    h_t = jax.block_until_ready(
        norm_ball_cbf_forward(states, safe_radius=1.0, force_tiled=True))
    assert h_t.shape == (B, A, T - 1), h_t.shape
    assert jnp.allclose(h_t, h_ref, atol=1e-4, rtol=1e-4), (h_t, h_ref)

    print("KERNEL_OK")
</pallas_src>

<mosaic_0001>
module attributes {stable_mosaic.version = 11 : i64} {
  func.func @_norm_ball_kernel(%arg0: i32, %arg1: memref<1x2x4x7xf32, #tpu.memory_space<vmem>>, %arg2: memref<1x2x1x7xf32, #tpu.memory_space<vmem>>, %arg3: memref<1x4x7xf32, #tpu.memory_space<vmem>>) attributes {dimension_semantics = [#tpu.dimension_semantics<parallel>], iteration_bounds = array<i64: 2>, scalar_prefetch = 0 : i64, scratch_operands = 0 : i64, tpu.core_type = #tpu.core_type<tc>, window_params = [{transform_indices = @transform_0, window_bounds = array<i64: 1, 2, 4, 7>}, {transform_indices = @transform_1, window_bounds = array<i64: 1, 2, 1, 7>}, {transform_indices = @transform_2, window_bounds = array<i64: 1, 4, 7>}]} {
    %c0 = arith.constant 0 : index
    %c0_0 = arith.constant 0 : index
    %c0_1 = arith.constant 0 : index
    %c0_2 = arith.constant 0 : index
    %0 = vector.load %arg1[%c0, %c0_0, %c0_1, %c0_2] : memref<1x2x4x7xf32, #tpu.memory_space<vmem>>, vector<1x1x4x7xf32>
    %1 = vector.shape_cast %0 : vector<1x1x4x7xf32> to vector<4x7xf32>
    %c0_3 = arith.constant 0 : index
    %c0_4 = arith.constant 0 : index
    %c0_5 = arith.constant 0 : index
    %c0_6 = arith.constant 0 : index
    %2 = vector.load %arg2[%c0_3, %c0_4, %c0_5, %c0_6] : memref<1x2x1x7xf32, #tpu.memory_space<vmem>>, vector<1x1x1x7xf32>
    %3 = vector.shape_cast %2 : vector<1x1x1x7xf32> to vector<1x7xf32>
    %4 = vector.broadcast %3 : vector<1x7xf32> to vector<4x7xf32>
    %5 = arith.subf %1, %4 : vector<4x7xf32>
    %c0_7 = arith.constant 0 : index
    %c1 = arith.constant 1 : index
    %c0_8 = arith.constant 0 : index
    %c0_9 = arith.constant 0 : index
    %6 = vector.load %arg1[%c0_7, %c1, %c0_8, %c0_9] : memref<1x2x4x7xf32, #tpu.memory_space<vmem>>, vector<1x1x4x7xf32>
    %7 = vector.shape_cast %6 : vector<1x1x4x7xf32> to vector<4x7xf32>
    %c0_10 = arith.constant 0 : index
    %c1_11 = arith.constant 1 : index
    %c0_12 = arith.constant 0 : index
    %c0_13 = arith.constant 0 : index
    %8 = vector.load %arg2[%c0_10, %c1_11, %c0_12, %c0_13] : memref<1x2x1x7xf32, #tpu.memory_space<vmem>>, vector<1x1x1x7xf32>
    %9 = vector.shape_cast %8 : vector<1x1x1x7xf32> to vector<1x7xf32>
    %10 = vector.broadcast %9 : vector<1x7xf32> to vector<4x7xf32>
    %11 = arith.subf %7, %10 : vector<4x7xf32>
    %12 = arith.mulf %5, %5 : vector<4x7xf32>
    %13 = arith.mulf %11, %11 : vector<4x7xf32>
    %14 = arith.addf %12, %13 : vector<4x7xf32>
    %cst = arith.constant 1.000000e+00 : f32
    %15 = vector.broadcast %cst : f32 to vector<4x7xf32>
    %16 = arith.subf %14, %15 : vector<4x7xf32>
    %c0_14 = arith.constant 0 : index
    %c0_15 = arith.constant 0 : index
    %c0_16 = arith.constant 0 : index
    %17 = vector.load %arg3[%c0_14, %c0_15, %c0_16] : memref<1x4x7xf32, #tpu.memory_space<vmem>>, vector<1x4x7xf32>
    %18 = vector.shape_cast %17 : vector<1x4x7xf32> to vector<4x7xf32>
    %19 = vector.shape_cast %16 : vector<4x7xf32> to vector<1x4x7xf32>
    tpu.vector_store %arg3[%c0_14, %c0_15, %c0_16], %19 {strides = array<i32>} : memref<1x4x7xf32, #tpu.memory_space<vmem>>, vector<1x4x7xf32>,
    return
  }
  func.func @transform_0(%arg0: i32) -> (i32, i32, i32, i32) {
    %c0_i32 = arith.constant 0 : i32
    %c0_i32_0 = arith.constant 0 : i32
    %c0_i32_1 = arith.constant 0 : i32
    %c0_i32_2 = arith.constant 0 : i32
    return %arg0, %c0_i32, %c0_i32_0, %c0_i32_1 : i32, i32, i32, i32
  }
  func.func @transform_1(%arg0: i32) -> (i32, i32, i32, i32) {
    %c0_i32 = arith.constant 0 : i32
    %c0_i32_0 = arith.constant 0 : i32
    %c0_i32_1 = arith.constant 0 : i32
    %c0_i32_2 = arith.constant 0 : i32
    return %arg0, %c0_i32, %c0_i32_0, %c0_i32_1 : i32, i32, i32, i32
  }
  func.func @transform_2(%arg0: i32) -> (i32, i32, i32) {
    %c0_i32 = arith.constant 0 : i32
    %c0_i32_0 = arith.constant 0 : i32
    %c0_i32_1 = arith.constant 0 : i32
    return %arg0, %c0_i32, %c0_i32_0 : i32, i32, i32
  }
}

</mosaic_0001>

<bundles_post_ra>
// kernel: tpu_custom_call.1
= control target key start
LH: loop header
LB: loop body
LE: loop exit
PB: predicated region body
PF: predicated region fallthrough
CT: control target
= control target key end

     0   :  { %7 = vsyncpa [#allocation3], 0  ;;  %s779_s0 = inlined_call_operand.hbm [shape: f32[2,2,4,7], index: 0, kind: input, shape index: {}]   ;;  %s780_s1 = inlined_call_operand.hbm [shape: f32[2,2,1,7], index: 1, kind: input, shape index: {}]   ;;  %s781_s2 = inlined_call_operand.hbm [shape: f32[2,4,7], index: 2, kind: output, shape index: {}]  }
   0x1   :  { %9 = vsyncpa [#allocation3 + $0x1], 0 }
   0x2   :  { %10 = vsyncpa [#allocation6], 0 }
   0x3   :  { %12 = vsyncpa [#allocation6 + $0x1], 0 }
   0x4   :  { %13 = vsyncpa [#allocation4], 0 }
   0x5   :  { %15 = vsyncpa [#allocation4 + $0x1], 0  ;;  %s568_s9 = smov 0   ;;  %s570_s10 = smov 0  }
   0x6   :  { %s572_s11 = smov 0   ;;  %s574_s12 = smov 0  }
   0x7 LB: > { %s589_s13 = sadd.s32 4294967295, %s544_s12   ;;  %s335_s14 = sadd.s32 4294967294, %s544_s12   ;;  %s544_s12 = sphi %s574_s12, %s797_s12   ;;  %s540_s11 = sphi %s572_s11, %s796_s11   ;;  %s536_s10 = sphi %s570_s10, %s795_s10   ;;  %s532_s9 = sphi %s568_s9, %s794_s9  }
   0x8   : > { %s593_s15 = sadd.s32 1, %s544_s12   ;;  %s28_s16 = sadd.s32 1, %s540_s11 }
   0x9   : > { %s25_s17 = ssub.s32 %s544_s12, %s593_s15  ;;  %p35_p0 = scmp.ne.s32.totalorder %s540_s11, %s536_s10 }
   0xa   : > { %p26_p1 = scmp.eq.s32.totalorder %s25_s17, 0  ;;  %p36_p2 = scmp.eq.s32.totalorder %s544_s12, 0 }
   0xb   : > { %p41_p3 = scmp.ne.s32.totalorder %s536_s10, %s532_s9  ;;  %p42_p4 = scmp.eq.s32.totalorder %s589_s13, 0 }
   0xc   : > { %s605_s18 = scalar_select %p26_p1, %s540_s11, %s28_s16  }
   0xd   : > { %p607_p5 = por %p36_p2, %p35_p0  ;;  %p611_p6 = por %p42_p4, %p41_p3 }
   0xe   : > { %p91_p7 = scmp.eq.s32.totalorder %s589_s13, 1  ;;  %p97_p8 = scmp.eq.s32.totalorder %s335_s14, 1 }
   0xf   : > { %s785_s20 = scalar_select %p611_p6, 1, 0 }
  0x10   : > { %p376_p10 = scmp.lt.s32.totalorder %s544_s12, 2  ;;  %p618_p11 = por %p91_p7, %p35_p0 }
  0x11   : > { %p622_p12 = por %p97_p8, %p41_p3  ;;  %s627_s23 = sand.u32 1, %s540_s11  }
  0x12   : > { %s786_s21 = scalar_select %p618_p11, 1, 0 }
  0x13   : > { %s787_s22 = scalar_select %p622_p12, 1, 0 }
  0x14   : > { %s357_s24 = sshll.u32 %s544_s12, 7  ;;  %s338_s25 = sshll.u32 %s627_s23, 3 }
  0x15   : > { %s634_s28 = scalar_lea.hbm %s779_s0, %s357_s24  ;;  %s121_s29 = scalar_lea.vmem [#allocation2], %s338_s25 }
  0x16   : > { %s128_s30 = sshll.u32 %s121_s29, 4  ;;  %p638_p13 = pnand %p376_p10, %p607_p5  ;;  %s642_s30 = int_to_ptr.vmem [resolvable:$true] %s128_s30 }
  0x17   : > { %s118_s4 = scalar_lea.sflag [#allocation3], %s627_s23  ;;  %s414_s5 = scalar_lea.hbm %s634_s28, 128 }
  0x18   : > { %p415_p0 = scmp.ne.s32.totalorder %s634_s28, %s414_s5  ;;  %p416_p1 = pneg %p638_p13 }
  0x19   : > { %s419_s8 = scalar_lea.hbm %s779_s0, 256  ;;  %p420_p4 = scmp.lt.u32.totalorder %s634_s28, %s779_s0 }
  0x1a   : > { %p417_p2 = pnand %p416_p1, %p415_p0  ;;  %p421_p5 = scmp.lt.u32.totalorder %s419_s8, %s414_s5 }
  0x1b   : > { %p423_p8 = scmp.lt.u32.totalorder %s414_s5, %s634_s28 }
  0x1c   : > { %p418_p3 = pneg %p417_p2  ;;  %p422_p7 = por %p421_p5, %p420_p4 }
  0x1e   : > { %p424_p10 = por %p423_p8, %p422_p7 }
  0x20   : > { %p425_p9 = pnand %p424_p10, %p418_p3 }
  0x22   : > { %428 = shalt.err (!%p425_p9)
}
  0x23   : > { %s429_s17 = scalar_lea.vmem %s642_s30, 128  ;;  %s546_s19 = smov [#allocation2]  }
  0x24   : > { %p430_p0 = scmp.ne.s32.totalorder %s642_s30, %s429_s17  ;;  %s434_s24 = sshll.u32 %s546_s19, 4  ;;  %s435_s24 = int_to_ptr.vmem [resolvable:$false] %s434_s24 }
  0x25   : > { %s436_s25 = scalar_lea.vmem %s435_s24, 256  ;;  %p437_p11 = scmp.lt.s32.totalorder %s642_s30, %s435_s24 }
  0x26   : > { %p432_p2 = pnand %p430_p0, %p416_p1  ;;  %p438_p4 = scmp.lt.s32.totalorder %s436_s25, %s429_s17 }
  0x28   : > { %p433_p12 = pneg %p432_p2  ;;  %p439_p5 = por %p438_p4, %p437_p11 }
  0x2a   : > { %p440_p7 = pnand %p439_p5, %p433_p12 }
  0x2c   : > { %443 = shalt.err (!%p440_p7)
}
  0x2d   : > { %s547_s26 = smov 64   ;;  %s548_s27 = smov 4  }
  0x2e   : > { %368 = dma.hbm_to_vmem [thread:$0]  (!%p638_p13), %s634_s28, 128, %s642_s30, %s118_s4, %s547_s26, %s547_s26, %s548_s27  }
  0x2f   : > { %p344_p9 = scmp.ge.s32.totalorder %s544_s12, 1  ;;  %p157_p3 = scmp.lt.s32.totalorder %s544_s12, 3 }
  0x30   : > { %s341_s29 = sshll.u32 %s627_s23, 1  ;;  %s358_s6 = sshll.u32 %s544_s12, 5 }
  0x31   : > { %p675_p11 = pnand %p344_p9, %p157_p3  ;;  %s142_s7 = scalar_lea.vmem [#allocation5], %s341_s29 }
  0x32   : > { %s149_s8 = sshll.u32 %s142_s7, 4  ;;  %s683_s17 = scalar_lea.hbm %s780_s1, %s358_s6  ;;  %s685_s8 = int_to_ptr.vmem [resolvable:$true] %s149_s8 }
  0x33   : > { %s139_s28 = scalar_lea.sflag [#allocation6], %s627_s23  ;;  %s444_s30 = scalar_lea.hbm %s683_s17, 32 }
  0x34   : > { %p445_p12 = scmp.ne.s32.totalorder %s683_s17, %s444_s30  ;;  %s449_s24 = scalar_lea.hbm %s780_s1, 64 }
  0x35   : > { %p450_p0 = scmp.lt.u32.totalorder %s683_s17, %s780_s1  ;;  %p451_p2 = scmp.lt.u32.totalorder %s449_s24, %s444_s30 }
  0x36   : > { %p447_p8 = pnand %p445_p12, %p416_p1  ;;  %p453_p5 = scmp.lt.u32.totalorder %s444_s30, %s683_s17 }
  0x37   : > { %p452_p4 = por %p451_p2, %p450_p0 }
  0x38   : > { %p448_p10 = pneg %p447_p8 }
  0x39   : > { %p454_p7 = por %p453_p5, %p452_p4 }
  0x3b   : > { %p455_p9 = pnand %p454_p7, %p448_p10 }
  0x3d   : > { %458 = shalt.err (!%p455_p9)
}
  0x3e   : > { %s459_s27 = scalar_lea.vmem %s685_s8, 32  ;;  %s549_s29 = smov [#allocation5]  }
  0x3f   : > { %p460_p3 = scmp.ne.s32.totalorder %s685_s8, %s459_s27  ;;  %s464_s6 = sshll.u32 %s549_s29, 4  ;;  %s465_s6 = int_to_ptr.vmem [resolvable:$false] %s464_s6 }
  0x40   : > { %s466_s7 = scalar_lea.vmem %s465_s6, 64  ;;  %p467_p6 = scmp.lt.s32.totalorder %s685_s8, %s465_s6 }
  0x41   : > { %p462_p12 = pnand %p460_p3, %p416_p1  ;;  %p468_p0 = scmp.lt.s32.totalorder %s466_s7, %s459_s27 }
  0x43   : > { %p463_p8 = pneg %p462_p12  ;;  %p469_p2 = por %p468_p0, %p467_p6 }
  0x45   : > { %p470_p4 = pnand %p469_p2, %p463_p8 }
  0x47   : > { %473 = shalt.err (!%p470_p4)
}
  0x48   : > { %s550_s14 = smov 16   ;;  %s551_s16 = smov 1  }
  0x49   : > { %371 = dma.hbm_to_vmem [thread:$0]  (!%p638_p13), %s683_s17, 32, %s685_s8, %s139_s28, %s550_s14, %s550_s14, %s551_s16  }
  0x4a   : > { %161 = sbr.rel (%p675_p11) target bundleno = 112 (0x70), region = 28  ;;  %s716_s30 = sand.u32 (!%p675_p11), 1, %s536_s10  }
  0x4b   : > { %s345_s4 = sshll.u32 (!%p675_p11), %s716_s30, 3  ;;  %s164_s19 = scalar_lea.sflag (!%p675_p11), [#allocation3], %s716_s30 }
  0x4c   : > { %s167_s24 = scalar_lea.vmem (!%p675_p11), [#allocation2], %s345_s4  ;;  %p790_p6 = scmp.ne.s32.totalorder (!%p675_p11), %s785_s20, 0 }
  0x51   : > { %519 = dma.done.wait (%p790_p6), %s164_s19, 128  }
  0x52   : > { %521 = vsyncadd (%p790_p6), %s164_s19, 4294967168  ;;  %s346_s23 = sshll.u32 %s716_s30, 1  ;;  %s173_s3 = scalar_lea.sflag [#allocation6], %s716_s30 }
  0x53   : > { %s176_s5 = scalar_lea.vmem [#allocation5], %s346_s23 }
  0x54   : > { %523 = dma.done.wait (%p790_p6), %s173_s3, 32  }
  0x55   : > { %525 = vsyncadd (%p790_p6), %s173_s3, 4294967264  ;;  %s347_s8 = sshll.u32 %s716_s30, 2  ;;  %v202_v0 = vld [vmem:[%s167_s24] sm:$0xf]  ;;  %v348_v1 = vld [vmem:[%s176_s5] ss:$0 sm:$0xff] }
  0x56   : > { %v349_v2 = vld [vmem:[%s167_s24 + $0x4] sm:$0xf]  ;;  %v210_v3 = vsub.f32 %v202_v0, %v348_v1  ;;  %v351_v4 = vld [vmem:[%s176_s5 + $0x1] ss:$0 sm:$0xff]  ;;  %s201_s17 = scalar_lea.vmem [#allocation7], %s347_s8  ;;  %s354_s25 = sshll.u32 %s589_s13, 6 }
  0x57   : > { %v221_v5 = vsub.f32 %v349_v2, %v351_v4  ;;  %s242_s28 = sshll.u32 %s201_s17, 4  ;;  %vm226_vm0 = vcmask 52224   ;;  %s737_s27 = scalar_lea.hbm %s781_s2, %s354_s25  ;;  %s732_s28 = int_to_ptr.vmem [resolvable:$true] %s242_s28 }
  0x58   : > { %v222_v6 = vmul.f32 %v210_v3, %v210_v3  ;;  %s229_s29 = scalar_lea.sflag [#allocation4], %s716_s30  ;;  %s474_s6 = scalar_lea.vmem %s732_s28, 64 }
  0x59   : > { %v223_v7 = vmul.f32 %v221_v5, %v221_v5  ;;  %p475_p13 = scmp.ne.s32.totalorder %s732_s28, %s474_s6  ;;  %p791_p1 = scmp.ne.s32.totalorder %s786_s21, 0 }
  0x5a   : > { %s552_s13 = smov [#allocation7]  }
  0x5b   : > { %v224_v8 = vadd.f32 %v223_v7, %v222_v6  ;;  %p476_p11 = pnand %p475_p13, %p791_p1  ;;  %s478_s7 = sshll.u32 %s552_s13, 4  ;;  %s479_s7 = int_to_ptr.vmem [resolvable:$false] %s478_s7 }
  0x5c   : > { %s480_s14 = scalar_lea.vmem %s479_s7, 128  ;;  %p481_p5 = scmp.lt.s32.totalorder %s732_s28, %s479_s7 }
  0x5d   : > { %v352_v9 = vadd.f32 -1.0, %v224_v8  ;;  %p477_p10 = pneg %p476_p11  ;;  %p482_p7 = scmp.lt.s32.totalorder %s480_s14, %s474_s6 }
  0x5f   : > { %227 = vst.msk [vmem:[%s201_s17] sm:$0xf] %vm226_vm0, %v352_v9  ;;  %p483_p9 = por %p482_p7, %p481_p5 }
  0x61   : > { %p484_p3 = pnand %p483_p9, %p477_p10 }
  0x63   : > { %487 = shalt.err (!%p484_p3)
}
  0x64   : > { %s488_s16 = scalar_lea.hbm %s737_s27, 64  ;;  %s492_s19 = scalar_lea.hbm %s781_s2, 128 }
  0x65   : > { %p489_p12 = scmp.ne.s32.totalorder %s737_s27, %s488_s16  ;;  %p493_p2 = scmp.lt.u32.totalorder %s737_s27, %s781_s2 }
  0x66   : > { %p494_p4 = scmp.lt.u32.totalorder %s492_s19, %s488_s16  ;;  %p496_p13 = scmp.lt.u32.totalorder %s488_s16, %s737_s27 }
  0x67   : > { %p490_p8 = pnand %p489_p12, %p791_p1 }
  0x68   : > { %p495_p6 = por %p494_p4, %p493_p2 }
  0x69   : > { %p491_p0 = pneg %p490_p8 }
  0x6a   : > { %p497_p11 = por %p496_p13, %p495_p6 }
  0x6c   : > { %p498_p10 = pnand %p497_p11, %p491_p0 }
  0x6e   : > { %501 = shalt.err (!%p498_p10)
}
  0x6f   : > { %363 = dma.vmem_to_hbm [thread:$0]  (%p791_p1), %s732_s28, 64, %s737_s27, %s229_s29  }
  0x70 PF: > { %s254_s3 = sand.u32 1, %s532_s9   ;;  %p792_p5 = scmp.ne.s32.totalorder %s787_s22, 0 }
  0x71   : > { %p793_p7 = scmp.ge.s32.totalorder %s544_s12, 2  ;;  %s255_s5 = scalar_lea.sflag [#allocation4], %s254_s3 }
  0x73   : > { %p373_p9 = pnand %p793_p7, %p792_p5 }
  0x75   : > { %527 = dma.done.wait (!%p373_p9), %s255_s5, 64  }
  0x76   : > { %529 = vsyncadd (!%p373_p9), %s255_s5, 4294967232  ;;  %p18_p3 = scmp.ge.s32.totalorder %s593_s15, 4   ;;  %s794_s9 = smov %s536_s10 }
  0x77   : > { %s795_s10 = smov %s540_s11  ;;  %s796_s11 = smov %s605_s18 }
  0x78   : > { %s797_s12 = smov %s593_s15  ;;  %20 = sbr.rel (!%p18_p3) target bundleno = 7 (0x7), region = 88 }
  0x7f   :  { %260 = vsyncpa [#allocation3], 1 }
  0x80   :  { %262 = vsyncpa [#allocation3 + $0x1], 1 }
  0x81   :  { %263 = vsyncpa [#allocation6], 1 }
  0x82   :  { %265 = vsyncpa [#allocation6 + $0x1], 1 }
  0x83   :  { %266 = vsyncpa [#allocation4], 1 }
  0x84   :  { %268 = vsyncpa [#allocation4 + $0x1], 1 }

</bundles_post_ra>
